<compile_context>
chip_gen: v5e
topology: v5e:2x2
jax: 0.10.0
libtpu: 0.0.40
codegen_flags: <defaults>
</compile_context>

<pallas_src>
import jax
import jax.numpy as jnp
from jax.experimental import pallas as pl
from jax.experimental.pallas import tpu as pltpu


def _srn_loss_kernel(lab_ref, word_ref, gsrm_ref, vsfd_ref, out_ref):
    # lab_ref:  (R, 1) int32          label per row; -1 marks padded/OOB rows
    # word/gsrm/vsfd_ref: (R, C)      logits tile; C is the FULL class dim
    #                                 (ragged lanes masked by Mosaic reduces)
    # out_ref:  (1, 3, 128) float32   resident per-shard partial sums
    t = pl.program_id(1)

    @pl.when(t == 0)
    def _():
        out_ref[...] = jnp.zeros_like(out_ref)

    lab = lab_ref[...]                                        # (R, 1) int32
    r, c = word_ref.shape
    class_ids = jax.lax.broadcasted_iota(jnp.int32, (r, c), 1)
    onehot = class_ids == lab                                 # (R, C) bool (shared)
    valid = lab >= 0                                          # (R, 1) bool

    def ce_sum(ref):
        x = ref[...].astype(jnp.float32)                      # (R, C)
        m = jnp.max(x, axis=-1, keepdims=True)                # (R, 1)
        xm = x - m                                            # x streamed once
        # NOTE: if a v7x/bf16 bundle dump shows the XLU as the binding slot,
        # these two lane reductions can be offloaded to the idle MXU via a
        # ones-vector matmul; left as jnp.sum (HBM-bound on v5e/v6e).
        lse_m = jnp.log(jnp.sum(jnp.exp(xm), axis=-1, keepdims=True))
        picked_m = jnp.sum(jnp.where(onehot, xm, 0.0), axis=-1, keepdims=True)
        # Select (not multiply-by-mask): discards NaN/Inf from undefined
        # out-of-bounds tail rows of the partial last tile.
        contrib = jnp.where(valid, lse_m - picked_m, 0.0)     # == lse - x[label]
        return jnp.sum(contrib)                               # scalar partial

    pw = ce_sum(word_ref)
    pg = ce_sum(gsrm_ref)
    pv = ce_sum(vsfd_ref)

    slot = jax.lax.broadcasted_iota(jnp.int32, out_ref.shape, 1)   # (1, 3, 128)
    out_ref[...] += (jnp.where(slot == 0, pw, 0.0)
                     + jnp.where(slot == 1, pg, 0.0)
                     + jnp.where(slot == 2, pv, 0.0))


def _round_up(x, m):
    return (x + m - 1) // m * m


def _vmem_capacity_bytes():
    try:
        return int(pltpu.get_tpu_info().vmem_capacity_bytes)
    except Exception:
        return 128 << 20                 # v5e / v6e physical VMEM


def _num_tensorcores():
    # Best-effort query; 2 only matters for megacore sharding (v7x etc.).
    try:
        info = pltpu.get_tpu_info()
        for attr in ("num_cores", "core_count", "num_tensorcores",
                     "tensor_core_count"):
            v = getattr(info, attr, None)
            if v is not None and int(v) > 0:
                return int(v)
    except Exception:
        pass
    try:
        kind = (jax.devices()[0].device_kind or "").lower()
        if any(tag in kind for tag in ("v4", "v5p", "v7")):
            return 2
    except Exception:
        pass
    return 1


def _ref_srn_loss(predicts, batch):
    """Pure-JAX reference (also the fallback path for tiny / empty inputs)."""
    lab = jnp.reshape(batch[1], (-1,)).astype(jnp.int32)

    def ce_sum(logits):
        logp = jax.nn.log_softmax(logits.astype(jnp.float32), axis=-1)
        picked = jnp.take_along_axis(logp, lab[:, None], axis=-1)
        return -jnp.sum(picked)

    cw = ce_sum(predicts["word_out"])
    cg = ce_sum(predicts["gsrm_out"])
    cv = ce_sum(predicts["predict"])
    total = cw * 3.0 + cv + cg * 0.15
    return {"loss": total.reshape(1), "word_loss": cw.reshape(1),
            "img_loss": cv.reshape(1)}


def srn_loss(predicts, batch, *, rows_per_tile=None, min_rows_for_kernel=1024):
    """Mirror of SRNLoss.forward.

    predicts: dict with 'predict', 'word_out', 'gsrm_out', each [N, C] logits
    (f32 or bf16).  Pass bf16 logits straight through if the producer emits
    them (the kernel upcasts to f32 in VMEM); do NOT cast in the wrapper --
    that would add an extra full HBM pass.  batch[1] is the integer label,
    any shape flattening to N.  Problems with fewer than `min_rows_for_kernel`
    rows are routed to the plain XLA path (per-call / per-grid-step overhead
    dominates below ~1K rows).
    """
    word = predicts["word_out"]
    gsrm = predicts["gsrm_out"]
    vsfd = predicts["predict"]
    label = batch[1]

    # torch cast to int64 + reshape([-1, 1]); int32 class indices suffice here.
    lab = jnp.reshape(label, (-1,)).astype(jnp.int32)
    n, c = word.shape

    if n == 0:
        z = jnp.zeros((1,), jnp.float32)
        return {"loss": z, "word_loss": z, "img_loss": z}
    if n < min_rows_for_kernel:
        return _ref_srn_loss(predicts, batch)

    dtype = word.dtype
    itemsize = jnp.dtype(dtype).itemsize

    # --- tile sizing --------------------------------------------------------
    # Target ~6 MiB of logits (all 3 streams) per grid step so the ~0.35 us
    # fixed per-step cost is negligible vs. the step's DMA time (>90% of HBM
    # roofline), while the double-buffered footprint stays inside a
    # per-generation VMEM budget (3/4 of physical: ~96 MiB v5e/v6e, ~48 MiB v7x).
    vmem_cap = _vmem_capacity_bytes()
    vmem_limit = int(vmem_cap * 3 // 4)
    stream_budget = int(vmem_limit * 4 // 5)        # headroom for labels/out/etc.

    if rows_per_tile is None:
        target_bytes = 6 << 20
        rows = target_bytes // (3 * c * itemsize)
    else:
        rows = int(rows_per_tile)
    rows = min(rows, _round_up(n, 8))                               # problem size
    rows = min(rows, stream_budget // (2 * 3 * c * itemsize))       # VMEM budget
    rows = max(8, rows // 8 * 8)

    n_tiles = (n + rows - 1) // rows
    shards = 2 if (_num_tensorcores() >= 2 and n_tiles >= 2) else 1
    tiles_per_shard = (n_tiles + shards - 1) // shards
    n_pad = shards * tiles_per_shard * rows

    # Only the tiny label vector is padded (so `valid = lab >= 0` masks both
    # the partial last tile and any fully-OOB shard-tail tile).  The three
    # logits streams are streamed unpadded -- no extra HBM copies.
    if n_pad != n:
        lab = jnp.pad(lab, [(0, n_pad - n)], constant_values=-1)
    lab = lab[:, None]                                     # (n_pad, 1)

    last_blk = n_tiles - 1

    def logits_map(s, t):
        # Clamp so a fully-OOB shard-tail tile re-reads the last valid block
        # (its rows are label-masked anyway).
        return (jnp.minimum(s * tiles_per_shard + t, last_blk), 0)

    def label_map(s, t):
        return (s * tiles_per_shard + t, 0)

    cost = pl.CostEstimate(
        flops=int(6 * 3 * n * c),
        transcendentals=int(3 * n * c),
        bytes_accessed=int(3 * n * c * itemsize + n_pad * 4
                           + shards * 3 * 128 * 4),
    )

    out = pl.pallas_call(
        _srn_loss_kernel,
        out_shape=jax.ShapeDtypeStruct((shards, 3, 128), jnp.float32),
        grid_spec=pltpu.PrefetchScalarGridSpec(
            num_scalar_prefetch=0,
            grid=(shards, tiles_per_shard),
            in_specs=[
                pl.BlockSpec((rows, 1), label_map),        # labels (tiny, padded)
                pl.BlockSpec((rows, c), logits_map),       # word_out (unpadded)
                pl.BlockSpec((rows, c), logits_map),       # gsrm_out (unpadded)
                pl.BlockSpec((rows, c), logits_map),       # predict  (unpadded)
            ],
            out_specs=pl.BlockSpec((1, 3, 128), lambda s, t: (s, 0, 0)),
        ),
        compiler_params=pltpu.CompilerParams(
            dimension_semantics=("parallel", "arbitrary"),
            vmem_limit_bytes=vmem_limit),
        cost_estimate=cost,
    )(lab, word, gsrm, vsfd)

    partials = jnp.sum(out[:, :, 0], axis=0)        # (3,) = [word, gsrm, vsfd]
    cost_word = partials[0]
    cost_gsrm = partials[1]
    cost_vsfd = partials[2]
    total = cost_word * 3.0 + cost_vsfd + cost_gsrm * 0.15
    # TODO(synk): like the original module, gsrm_loss is computed but not returned.
    return {
        "loss": total.reshape(1),
        "word_loss": cost_word.reshape(1),
        "img_loss": cost_vsfd.reshape(1),
    }


if __name__ == "__main__":
    def make_case(key, n, c, dtype):
        k1, k2, k3, k4 = jax.random.split(key, 4)
        predicts = {
            "word_out": jax.random.normal(k1, (n, c), jnp.float32).astype(dtype),
            "gsrm_out": jax.random.normal(k2, (n, c), jnp.float32).astype(dtype),
            "predict": jax.random.normal(k3, (n, c), jnp.float32).astype(dtype),
        }
        label = jax.random.randint(k4, (n,), 0, c, dtype=jnp.int32)
        return predicts, label

    key = jax.random.PRNGKey(0)
    k0, k1, k2 = jax.random.split(key, 3)

    # Case 1: toy shapes implied by the module (batch=2, seq=8, classes=64).
    # Exercises a single-tile grid with a ragged (C=64) lane axis, kernel path
    # forced via min_rows_for_kernel=0.
    p1, l1 = make_case(k0, 2 * 8, 64, jnp.float32)
    b1 = (None, l1.reshape(2, 8))
    o1 = jax.tree_util.tree_map(
        jax.block_until_ready, srn_loss(p1, b1, min_rows_for_kernel=0))
    r1 = _ref_srn_loss(p1, b1)
    for k in ("loss", "word_loss", "img_loss"):
        assert jnp.allclose(o1[k], r1[k], rtol=1e-5, atol=1e-3), (k, o1[k], r1[k])

    # Case 2: default (auto-derived) tiling, ragged C=300, f32, kernel path.
    p2, l2 = make_case(k1, 600, 300, jnp.float32)
    b2 = (None, l2)
    o2 = jax.tree_util.tree_map(
        jax.block_until_ready, srn_loss(p2, b2, min_rows_for_kernel=0))
    r2 = _ref_srn_loss(p2, b2)
    for k in ("loss", "word_loss", "img_loss"):
        assert jnp.allclose(o2[k], r2[k], rtol=1e-4, atol=1e-2), (k, o2[k], r2[k])

    # Case 3: bf16 logits, forced multi-tile grid with a partial last tile
    # (600 rows, 64-row tiles) and ragged C=300; f32 accumulation in-kernel.
    p3, l3 = make_case(k2, 600, 300, jnp.bfloat16)
    b3 = (None, l3)
    o3 = jax.tree_util.tree_map(
        jax.block_until_ready,
        srn_loss(p3, b3, rows_per_tile=64, min_rows_for_kernel=0))
    r3 = _ref_srn_loss(p3, b3)
    for k in ("loss", "word_loss", "img_loss"):
        assert jnp.allclose(o3[k], r3[k], rtol=1e-3, atol=1e-1), (k, o3[k], r3[k])

    # Empty-batch guard.
    p4 = {k: jnp.zeros((0, 64), jnp.float32) for k in ("word_out", "gsrm_out", "predict")}
    o4 = jax.tree_util.tree_map(
        jax.block_until_ready, srn_loss(p4, (None, jnp.zeros((0,), jnp.int32))))
    assert float(o4["loss"][0]) == 0.0

    print("KERNEL_OK")
</pallas_src>

<mosaic_0001>
module attributes {stable_mosaic.version = 11 : i64} {
  func.func @_srn_loss_kernel(%arg0: i32, %arg1: i32, %arg2: memref<16x1xi32, #tpu.memory_space<vmem>>, %arg3: memref<16x64xf32, #tpu.memory_space<vmem>>, %arg4: memref<16x64xf32, #tpu.memory_space<vmem>>, %arg5: memref<16x64xf32, #tpu.memory_space<vmem>>, %arg6: memref<1x3x128xf32, #tpu.memory_space<vmem>>) attributes {dimension_semantics = [#tpu.dimension_semantics<parallel>, #tpu.dimension_semantics<arbitrary>], iteration_bounds = array<i64: 1, 1>, scalar_prefetch = 0 : i64, scratch_operands = 0 : i64, tpu.core_type = #tpu.core_type<tc>, window_params = [{transform_indices = @transform_0, window_bounds = array<i64: 16, 1>}, {transform_indices = @transform_1, window_bounds = array<i64: 16, 64>}, {transform_indices = @transform_2, window_bounds = array<i64: 16, 64>}, {transform_indices = @transform_3, window_bounds = array<i64: 16, 64>}, {transform_indices = @transform_4, window_bounds = array<i64: 1, 3, 128>}]} {
    %c0_i32 = arith.constant 0 : i32
    %0 = arith.cmpi eq, %arg1, %c0_i32 : i32
    %1 = arith.extui %0 : i1 to i32
    %c0_i32_0 = arith.constant 0 : i32
    %2 = arith.cmpi ne, %1, %c0_i32_0 : i32
    scf.if %2 {
      %cst_36 = arith.constant 0.000000e+00 : f32
      %90 = vector.broadcast %cst_36 : f32 to vector<1x3x128xf32>
      %c0_37 = arith.constant 0 : index
      %c0_38 = arith.constant 0 : index
      %c0_39 = arith.constant 0 : index
      %91 = vector.load %arg6[%c0_37, %c0_38, %c0_39] : memref<1x3x128xf32, #tpu.memory_space<vmem>>, vector<1x3x128xf32>
      tpu.vector_store %arg6[%c0_37, %c0_38, %c0_39], %90 {strides = array<i32>} : memref<1x3x128xf32, #tpu.memory_space<vmem>>, vector<1x3x128xf32>,
    } else {
    }
    %c0 = arith.constant 0 : index
    %c0_1 = arith.constant 0 : index
    %3 = vector.load %arg2[%c0, %c0_1] : memref<16x1xi32, #tpu.memory_space<vmem>>, vector<16x1xi32>
    %4 = tpu.iota {dimensions = array<i32: 1>} : vector<16x64xi32>
    %5 = vector.broadcast %3 : vector<16x1xi32> to vector<16x64xi32>
    %6 = arith.cmpi eq, %4, %5 : vector<16x64xi32>
    %c0_i32_2 = arith.constant 0 : i32
    %7 = vector.broadcast %c0_i32_2 : i32 to vector<16x1xi32>
    %8 = arith.cmpi sge, %3, %7 : vector<16x1xi32>
    %c0_3 = arith.constant 0 : index
    %c0_4 = arith.constant 0 : index
    %9 = vector.load %arg3[%c0_3, %c0_4] : memref<16x64xf32, #tpu.memory_space<vmem>>, vector<16x64xf32>
    %cst = arith.constant dense<0xFF800000> : vector<16xf32>
    %10 = vector.multi_reduction <maximumf>, %9, %cst [1] : vector<16x64xf32> to vector<16xf32>
    %11 = vector.shape_cast %10 : vector<16xf32> to vector<16x1xf32>
    %12 = vector.broadcast %11 : vector<16x1xf32> to vector<16x64xf32>
    %13 = arith.subf %9, %12 : vector<16x64xf32>
    %14 = math.exp %13 : vector<16x64xf32>
    %cst_5 = arith.constant dense<0.000000e+00> : vector<16xf32>
    %15 = vector.multi_reduction <add>, %14, %cst_5 [1] : vector<16x64xf32> to vector<16xf32>
    %16 = vector.shape_cast %15 : vector<16xf32> to vector<16x1xf32>
    %17 = math.log %16 : vector<16x1xf32>
    %cst_6 = arith.constant 0.000000e+00 : f32
    %18 = vector.broadcast %cst_6 : f32 to vector<16x64xf32>
    %19 = arith.select %6, %13, %18 : vector<16x64xi1>, vector<16x64xf32>
    %cst_7 = arith.constant dense<0.000000e+00> : vector<16xf32>
    %20 = vector.multi_reduction <add>, %19, %cst_7 [1] : vector<16x64xf32> to vector<16xf32>
    %21 = vector.shape_cast %20 : vector<16xf32> to vector<16x1xf32>
    %22 = arith.subf %17, %21 : vector<16x1xf32>
    %cst_8 = arith.constant 0.000000e+00 : f32
    %23 = vector.broadcast %cst_8 : f32 to vector<16x1xf32>
    %24 = arith.select %8, %22, %23 : vector<16x1xi1>, vector<16x1xf32>
    %25 = vector.shape_cast %24 : vector<16x1xf32> to vector<1x16x1xf32>
    %cst_9 = arith.constant dense<0.000000e+00> : vector<1xf32>
    %26 = vector.multi_reduction <add>, %25, %cst_9 [1, 2] : vector<1x16x1xf32> to vector<1xf32>
    %27 = vector.shape_cast %26 : vector<1xf32> to vector<1x1x1xf32>
    %28 = vector.extract %27[0, 0, 0] : f32 from vector<1x1x1xf32>
    %c0_10 = arith.constant 0 : index
    %c0_11 = arith.constant 0 : index
    %29 = vector.load %arg4[%c0_10, %c0_11] : memref<16x64xf32, #tpu.memory_space<vmem>>, vector<16x64xf32>
    %cst_12 = arith.constant dense<0xFF800000> : vector<16xf32>
    %30 = vector.multi_reduction <maximumf>, %29, %cst_12 [1] : vector<16x64xf32> to vector<16xf32>
    %31 = vector.shape_cast %30 : vector<16xf32> to vector<16x1xf32>
    %32 = vector.broadcast %31 : vector<16x1xf32> to vector<16x64xf32>
    %33 = arith.subf %29, %32 : vector<16x64xf32>
    %34 = math.exp %33 : vector<16x64xf32>
    %cst_13 = arith.constant dense<0.000000e+00> : vector<16xf32>
    %35 = vector.multi_reduction <add>, %34, %cst_13 [1] : vector<16x64xf32> to vector<16xf32>
    %36 = vector.shape_cast %35 : vector<16xf32> to vector<16x1xf32>
    %37 = math.log %36 : vector<16x1xf32>
    %cst_14 = arith.constant 0.000000e+00 : f32
    %38 = vector.broadcast %cst_14 : f32 to vector<16x64xf32>
    %39 = arith.select %6, %33, %38 : vector<16x64xi1>, vector<16x64xf32>
    %cst_15 = arith.constant dense<0.000000e+00> : vector<16xf32>
    %40 = vector.multi_reduction <add>, %39, %cst_15 [1] : vector<16x64xf32> to vector<16xf32>
    %41 = vector.shape_cast %40 : vector<16xf32> to vector<16x1xf32>
    %42 = arith.subf %37, %41 : vector<16x1xf32>
    %cst_16 = arith.constant 0.000000e+00 : f32
    %43 = vector.broadcast %cst_16 : f32 to vector<16x1xf32>
    %44 = arith.select %8, %42, %43 : vector<16x1xi1>, vector<16x1xf32>
    %45 = vector.shape_cast %44 : vector<16x1xf32> to vector<1x16x1xf32>
    %cst_17 = arith.constant dense<0.000000e+00> : vector<1xf32>
    %46 = vector.multi_reduction <add>, %45, %cst_17 [1, 2] : vector<1x16x1xf32> to vector<1xf32>
    %47 = vector.shape_cast %46 : vector<1xf32> to vector<1x1x1xf32>
    %48 = vector.extract %47[0, 0, 0] : f32 from vector<1x1x1xf32>
    %c0_18 = arith.constant 0 : index
    %c0_19 = arith.constant 0 : index
    %49 = vector.load %arg5[%c0_18, %c0_19] : memref<16x64xf32, #tpu.memory_space<vmem>>, vector<16x64xf32>
    %cst_20 = arith.constant dense<0xFF800000> : vector<16xf32>
    %50 = vector.multi_reduction <maximumf>, %49, %cst_20 [1] : vector<16x64xf32> to vector<16xf32>
    %51 = vector.shape_cast %50 : vector<16xf32> to vector<16x1xf32>
    %52 = vector.broadcast %51 : vector<16x1xf32> to vector<16x64xf32>
    %53 = arith.subf %49, %52 : vector<16x64xf32>
    %54 = math.exp %53 : vector<16x64xf32>
    %cst_21 = arith.constant dense<0.000000e+00> : vector<16xf32>
    %55 = vector.multi_reduction <add>, %54, %cst_21 [1] : vector<16x64xf32> to vector<16xf32>
    %56 = vector.shape_cast %55 : vector<16xf32> to vector<16x1xf32>
    %57 = math.log %56 : vector<16x1xf32>
    %cst_22 = arith.constant 0.000000e+00 : f32
    %58 = vector.broadcast %cst_22 : f32 to vector<16x64xf32>
    %59 = arith.select %6, %53, %58 : vector<16x64xi1>, vector<16x64xf32>
    %cst_23 = arith.constant dense<0.000000e+00> : vector<16xf32>
    %60 = vector.multi_reduction <add>, %59, %cst_23 [1] : vector<16x64xf32> to vector<16xf32>
    %61 = vector.shape_cast %60 : vector<16xf32> to vector<16x1xf32>
    %62 = arith.subf %57, %61 : vector<16x1xf32>
    %cst_24 = arith.constant 0.000000e+00 : f32
    %63 = vector.broadcast %cst_24 : f32 to vector<16x1xf32>
    %64 = arith.select %8, %62, %63 : vector<16x1xi1>, vector<16x1xf32>
    %65 = vector.shape_cast %64 : vector<16x1xf32> to vector<1x16x1xf32>
    %cst_25 = arith.constant dense<0.000000e+00> : vector<1xf32>
    %66 = vector.multi_reduction <add>, %65, %cst_25 [1, 2] : vector<1x16x1xf32> to vector<1xf32>
    %67 = vector.shape_cast %66 : vector<1xf32> to vector<1x1x1xf32>
    %68 = vector.extract %67[0, 0, 0] : f32 from vector<1x1x1xf32>
    %69 = tpu.iota {dimensions = array<i32: 1>} : vector<1x3x128xi32>
    %c0_26 = arith.constant 0 : index
    %c0_27 = arith.constant 0 : index
    %c0_28 = arith.constant 0 : index
    %70 = vector.load %arg6[%c0_26, %c0_27, %c0_28] : memref<1x3x128xf32, #tpu.memory_space<vmem>>, vector<1x3x128xf32>
    %c0_i32_29 = arith.constant 0 : i32
    %71 = vector.broadcast %c0_i32_29 : i32 to vector<1x3x128xi32>
    %72 = arith.cmpi eq, %69, %71 : vector<1x3x128xi32>
    %cst_30 = arith.constant 0.000000e+00 : f32
    %73 = vector.broadcast %28 : f32 to vector<1x3x128xf32>
    %74 = vector.broadcast %cst_30 : f32 to vector<1x3x128xf32>
    %75 = arith.select %72, %73, %74 : vector<1x3x128xi1>, vector<1x3x128xf32>
    %c1_i32 = arith.constant 1 : i32
    %76 = vector.broadcast %c1_i32 : i32 to vector<1x3x128xi32>
    %77 = arith.cmpi eq, %69, %76 : vector<1x3x128xi32>
    %cst_31 = arith.constant 0.000000e+00 : f32
    %78 = vector.broadcast %48 : f32 to vector<1x3x128xf32>
    %79 = vector.broadcast %cst_31 : f32 to vector<1x3x128xf32>
    %80 = arith.select %77, %78, %79 : vector<1x3x128xi1>, vector<1x3x128xf32>
    %81 = arith.addf %75, %80 : vector<1x3x128xf32>
    %c2_i32 = arith.constant 2 : i32
    %82 = vector.broadcast %c2_i32 : i32 to vector<1x3x128xi32>
    %83 = arith.cmpi eq, %69, %82 : vector<1x3x128xi32>
    %cst_32 = arith.constant 0.000000e+00 : f32
    %84 = vector.broadcast %68 : f32 to vector<1x3x128xf32>
    %85 = vector.broadcast %cst_32 : f32 to vector<1x3x128xf32>
    %86 = arith.select %83, %84, %85 : vector<1x3x128xi1>, vector<1x3x128xf32>
    %87 = arith.addf %81, %86 : vector<1x3x128xf32>
    %88 = arith.addf %70, %87 : vector<1x3x128xf32>
    %c0_33 = arith.constant 0 : index
    %c0_34 = arith.constant 0 : index
    %c0_35 = arith.constant 0 : index
    %89 = vector.load %arg6[%c0_33, %c0_34, %c0_35] : memref<1x3x128xf32, #tpu.memory_space<vmem>>, vector<1x3x128xf32>
    tpu.vector_store %arg6[%c0_33, %c0_34, %c0_35], %88 {strides = array<i32>} : memref<1x3x128xf32, #tpu.memory_space<vmem>>, vector<1x3x128xf32>,
    return
  }
  func.func @transform_0(%arg0: i32, %arg1: i32) -> (i32, i32) {
    %c1_i32 = arith.constant 1 : i32
    %0 = arith.muli %arg0, %c1_i32 : i32
    %1 = arith.addi %0, %arg1 : i32
    %c0_i32 = arith.constant 0 : i32
    %c0_i32_0 = arith.constant 0 : i32
    return %1, %c0_i32 : i32, i32
  }
  func.func @transform_1(%arg0: i32, %arg1: i32) -> (i32, i32) {
    %c1_i32 = arith.constant 1 : i32
    %0 = arith.muli %arg0, %c1_i32 : i32
    %1 = arith.addi %0, %arg1 : i32
    %c0_i32 = arith.constant 0 : i32
    %2 = arith.minsi %1, %c0_i32 : i32
    %c0_i32_0 = arith.constant 0 : i32
    %c0_i32_1 = arith.constant 0 : i32
    return %2, %c0_i32_0 : i32, i32
  }
  func.func @transform_2(%arg0: i32, %arg1: i32) -> (i32, i32) {
    %c1_i32 = arith.constant 1 : i32
    %0 = arith.muli %arg0, %c1_i32 : i32
    %1 = arith.addi %0, %arg1 : i32
    %c0_i32 = arith.constant 0 : i32
    %2 = arith.minsi %1, %c0_i32 : i32
    %c0_i32_0 = arith.constant 0 : i32
    %c0_i32_1 = arith.constant 0 : i32
    return %2, %c0_i32_0 : i32, i32
  }
  func.func @transform_3(%arg0: i32, %arg1: i32) -> (i32, i32) {
    %c1_i32 = arith.constant 1 : i32
    %0 = arith.muli %arg0, %c1_i32 : i32
    %1 = arith.addi %0, %arg1 : i32
    %c0_i32 = arith.constant 0 : i32
    %2 = arith.minsi %1, %c0_i32 : i32
    %c0_i32_0 = arith.constant 0 : i32
    %c0_i32_1 = arith.constant 0 : i32
    return %2, %c0_i32_0 : i32, i32
  }
  func.func @transform_4(%arg0: i32, %arg1: i32) -> (i32, i32, i32) {
    %c0_i32 = arith.constant 0 : i32
    %c0_i32_0 = arith.constant 0 : i32
    %c0_i32_1 = arith.constant 0 : i32
    return %arg0, %c0_i32, %c0_i32_0 : i32, i32, i32
  }
}

</mosaic_0001>

<bundles_post_ra>
// kernel: tpu_custom_call.1
= control target key start
LH: loop header
LB: loop body
LE: loop exit
PB: predicated region body
PF: predicated region fallthrough
CT: control target
= control target key end

     0   :  { %9 = vsyncpa [#allocation3], 0  ;;  %s526_s0 = inlined_call_operand.vmem [shape: s32[16,1], index: 0, kind: input, shape index: {}]   ;;  %s527_s1 = inlined_call_operand.vmem [shape: f32[16,64], index: 1, kind: input, shape index: {}]   ;;  %s528_s2 = inlined_call_operand.hbm [shape: f32[16,64], index: 2, kind: input, shape index: {}]   ;;  %s529_s3 = inlined_call_operand.hbm [shape: f32[16,64], index: 3, kind: input, shape index: {}]   ;;  %s530_s4 = inlined_call_operand.vmem [shape: f32[1,3,128], index: 4, kind: output, shape index: {}]  }
   0x1   :  { %s45_s17 = sshll.u32 %s528_s2, 4  ;;  %s46_s17 = int_to_ptr.hbm [resolvable:$true] %s45_s17 }
   0x2   :  { %10 = vsyncpa [#allocation5], 0  ;;  %s416_s18 = smov [#allocation2]   ;;  %s64_s22 = sshll.u32 %s529_s3, 4  ;;  %s65_s22 = int_to_ptr.hbm [resolvable:$true] %s64_s22 }
   0x3   :  { %s47_s19 = sshll.u32 %s416_s18, 4  ;;  %s417_s23 = smov 128   ;;  %s48_s19 = int_to_ptr.vmem [resolvable:$true] %s47_s19 }
   0x4   :  { %s418_s24 = smov 8   ;;  %s419_s25 = smov [#allocation4]  }
   0x5   :  { %53 = dma.hbm_to_vmem [thread:$0]  %s46_s17, 256, %s48_s19, [#allocation3], %s417_s23, %s417_s23, %s418_s24  }
   0x6   :  { %s66_s26 = sshll.u32 %s419_s25, 4  ;;  %s67_s26 = int_to_ptr.vmem [resolvable:$true] %s66_s26 }
   0x7   :  { %72 = dma.hbm_to_vmem [thread:$0]  %s65_s22, 256, %s67_s26, [#allocation5], %s417_s23, %s417_s23, %s418_s24  }
   0x8   :  { %412 = dma.done.wait [#allocation3], 256  }
   0x9   :  { %413 = vsyncadd [#allocation3], 4294967040 }
   0xa   :  { %414 = dma.done.wait [#allocation5], 256  }
   0xb   :  { %415 = vsyncadd [#allocation5], 4294967040  ;;  %v420_v0 = vmov 0   ;;  %vm144_vm0 = vcmask 523264   ;;  %v192_v1 = vld [vmem:[#allocation2] sm:$0xff]  ;;  %v240_v5 = vld [vmem:[#allocation4] sm:$0xff]  ;;  %v130_v35 = vlaneseq }
   0xc   :  { %338 = vset.pattern.permute.xlu0 %v420_v0  ;;  %339 = vset.pattern.permute.xlu1 %v420_v0  ;;  %v142_v2 = vld [vmem:[%s527_s1] sm:$0xff]  ;;  %v194_v3 = vsel %vm144_vm0, %v192_v1, -inf  ;;  %v242_v6 = vsel %vm144_vm0, %v240_v5, -inf  ;;  %v193_v7 = vld [vmem:[#allocation2 + $0x8] sm:$0xff]  ;;  %v241_v9 = vld [vmem:[#allocation4 + $0x8] sm:$0xff]  ;;  %vm179_vm5 = vcmask 7168  }
   0xd   :  { %v145_v4 = vsel %vm144_vm0, %v142_v2, -inf  ;;  %195 = vmax.xlane.f32.xlu1 %v194_v3  ;;  %243 = vmax.xlane.f32.xlu2 %v242_v6  ;;  %v143_v8 = vld [vmem:[%s527_s1 + $0x8] sm:$0xff]  ;;  %v197_v10 = vsel %vm144_vm0, %v193_v7, -inf  ;;  %v245_v12 = vsel %vm144_vm0, %v241_v9, -inf  ;;  %v468_v13 = vld [vmem:[%s526_s0] sm:$0xff]  ;;  %v131_v37 = vand.u32 127, %v130_v35 }
   0xe   :  { %146 = vmax.xlane.f32.xlu0 %v145_v4  ;;  %v148_v11 = vsel %vm144_vm0, %v143_v8, -inf  ;;  %v474_v14 = vld [vmem:[%s526_s0 + $0x8] sm:$0xff]  ;;  %vm140_vm3 = vcmp.ge.s32.totalorder %v468_v13, 0 }
   0xf   :  { %vm141_vm4 = vcmp.ge.s32.totalorder %v474_v14, 0 }
  0x15   :  { %198 = vmax.xlane.f32.xlu1 %v197_v10  ;;  %246 = vmax.xlane.f32.xlu2 %v245_v12 }
  0x16   :  { %149 = vmax.xlane.f32.xlu0 %v148_v11 }
  0x2a   :  { %133 = vperm.xlu0 %338, %v468_v13  }
  0x2e   :  { %136 = vperm.xlu1 %339, %v474_v14  }
  0x80   :  { %v244_v17 = vpop.xlane.xlu2 %243  ;;  %v196_v21 = vpop.xlane.xlu1 %195 }
  0x81   :  { %v147_v15 = vpop.xlane.xlu0 %146  ;;  %v248_v18 = vsub.f32 %v240_v5, %v244_v17  ;;  %v200_v26 = vsub.f32 %v192_v1, %v196_v21 }
  0x82   :  { %v151_v16 = vsub.f32 %v142_v2, %v147_v15 }
  0x83   :  { %v250_v20 = vmul.f32 1.442695, %v248_v18  ;;  %v202_v30 = vmul.f32 1.442695, %v200_v26 }
  0x84   :  { %v153_v19 = vmul.f32 1.442695, %v151_v16 }
  0x86   :  { %340 = vpow2.f32 %v153_v19 }
  0x87   :  { %342 = vpow2.f32 %v250_v20 }
  0x88   :  { %v199_v31 = vpop.xlane.xlu1 %198  ;;  %v247_v40 = vpop.xlane.xlu2 %246 }
  0x89   :  { %v150_v22 = vpop.xlane.xlu0 %149  ;;  %v201_v33 = vsub.f32 %v193_v7, %v199_v31  ;;  %v249_v44 = vsub.f32 %v241_v9, %v247_v40 }
  0x8a   :  { %v152_v23 = vsub.f32 %v143_v8, %v150_v22 }
  0x8b   :  { %v204_v36 = vmul.f32 1.442695, %v201_v33  ;;  %v252_v52 = vmul.f32 1.442695, %v249_v44 }
  0x8c   :  { %v341_v24 = vpop.eup %340  ;;  %v155_v25 = vmul.f32 1.442695, %v152_v23 }
  0x8d   :  { %v157_v27 = vsel %vm144_vm0, %v341_v24, 0.0  ;;  %v343_v28 = vpop.eup %342 }
  0x8e   :  { %344 = vpow2.f32 %v155_v25  ;;  %158 = vadd.xlane.f32.xlu2 %v157_v27  ;;  %v254_v29 = vsel %vm144_vm0, %v343_v28, 0.0 }
  0x8f   :  { %255 = vadd.xlane.f32.xlu1 %v254_v29  ;;  %346 = vpow2.f32 %v202_v30 }
  0x90   :  { %348 = vpow2.f32 %v204_v36 }
  0x91   :  { %350 = vpow2.f32 %v252_v52 }
  0x94   :  { %v345_v32 = vpop.eup %344 }
  0x95   :  { %v160_v34 = vsel %vm144_vm0, %v345_v32, 0.0  ;;  %v347_v38 = vpop.eup %346 }
  0x96   :  { %161 = vadd.xlane.f32.xlu2 %v160_v34  ;;  %v206_v41 = vsel %vm144_vm0, %v347_v38, 0.0  ;;  %v349_v46 = vpop.eup %348 }
  0x97   :  { %v209_v49 = vsel %vm144_vm0, %v349_v46, 0.0  ;;  %v351_v55 = vpop.eup %350 }
  0x98   :  { %v257_v56 = vsel %vm144_vm0, %v351_v55, 0.0 }
  0x9c   :  { %v134_v39 = vpop.permute.xlu0 %133 }
  0x9d   :  { %vm138_vm1 = vcmp.eq.s32.totalorder %v131_v37, %v134_v39 }
  0x9e   :  { %207 = vadd.xlane.f32.xlu2 %v206_v41  ;;  %v167_v42 = vsel %vm138_vm1, %v151_v16, 0.0  ;;  %v216_v53 = vsel %vm138_vm1, %v200_v26, 0.0  ;;  %v264_v59 = vsel %vm138_vm1, %v248_v18, 0.0 }
  0x9f   :  { %v169_v43 = vsel %vm144_vm0, %v167_v42, 0.0  ;;  %v218_v54 = vsel %vm144_vm0, %v216_v53, 0.0  ;;  %v266_v60 = vsel %vm144_vm0, %v264_v59, 0.0 }
  0xa0   :  { %170 = vadd.xlane.f32.xlu0 %v169_v43  ;;  %v137_v45 = vpop.permute.xlu1 %136 }
  0xa1   :  { %vm139_vm2 = vcmp.eq.s32.totalorder %v131_v37, %v137_v45 }
  0xa2   :  { %v265_v47 = vsel %vm139_vm2, %v249_v44, 0.0  ;;  %v168_v50 = vsel %vm139_vm2, %v152_v23, 0.0  ;;  %v217_v57 = vsel %vm139_vm2, %v201_v33, 0.0 }
  0xa3   :  { %v269_v48 = vsel %vm144_vm0, %v265_v47, 0.0  ;;  %v172_v51 = vsel %vm144_vm0, %v168_v50, 0.0  ;;  %v221_v58 = vsel %vm144_vm0, %v217_v57, 0.0 }
  0xa4   :  { %270 = vadd.xlane.f32.xlu1 %v269_v48 }
  0xa6   :  { %210 = vadd.xlane.f32.xlu2 %v209_v49 }
  0xae   :  { %173 = vadd.xlane.f32.xlu2 %v172_v51 }
  0xb6   :  { %219 = vadd.xlane.f32.xlu2 %v218_v54 }
  0xbe   :  { %258 = vadd.xlane.f32.xlu2 %v257_v56 }
  0xc6   :  { %222 = vadd.xlane.f32.xlu2 %v221_v58 }
  0xce   :  { %267 = vadd.xlane.f32.xlu2 %v266_v60 }
 0x101   :  { %v159_v61 = vpop.xlane.xlu2 %158 }
 0x102   :  { %352 = vlog2.f32 %v159_v61  ;;  %v256_v19 = vpop.xlane.xlu1 %255 }
 0x108   :  { %v353_v0 = vpop.eup %352 }
 0x109   :  { %v162_v62 = vpop.xlane.xlu2 %161  ;;  %v164_v3 = vmul.f32 0.6931472, %v353_v0  ;;  %v421_v0 = vmov 0.0  }
 0x10a   :  { %354 = vlog2.f32 %v162_v62  ;;  %127 = vst [vmem:[%s530_s4] sm:$0x7] %v421_v0 }
 0x110   :  { %v355_v4 = vpop.eup %354 }
 0x111   :  { %v208_v63 = vpop.xlane.xlu2 %207  ;;  %v166_v6 = vmul.f32 0.6931472, %v355_v4 }
 0x112   :  { %356 = vlog2.f32 %v208_v63 }
 0x113   :  { %v171_v2 = vpop.xlane.xlu0 %170 }
 0x114   :  { %v175_v5 = vsub.f32 %v164_v3, %v171_v2 }
 0x116   :  { %v177_v8 = vsel %vm140_vm3, %v175_v5, 0.0 }
 0x117   :  { %v180_v11 = vsel %vm179_vm5, %v177_v8, 0.0  ;;  %v271_v31 = vpop.xlane.xlu1 %270  ;;  %v290_v8 = vld [vmem:[%s530_s4] sm:$0x7] }
 0x118   :  { %v357_v17 = vpop.eup %356 }
 0x119   :  { %v211_v1 = vpop.xlane.xlu2 %210  ;;  %v213_v20 = vmul.f32 0.6931472, %v357_v17 }
 0x11a   :  { %358 = vlog2.f32 %v211_v1  ;;  %v289_v1 = vshrl.u32 %v130_v35, 7 }
 0x11c   :  { %vm294_vm6 = vcmp.eq.s32.totalorder %v289_v1, 1  ;;  %vm291_vm7 = vcmp.eq.s32.totalorder %v289_v1, 0  ;;  %vm298_vm8 = vcmp.eq.s32.totalorder %v289_v1, 2 }
 0x120   :  { %v359_v21 = vpop.eup %358 }
 0x121   :  { %v174_v7 = vpop.xlane.xlu2 %173  ;;  %v215_v24 = vmul.f32 0.6931472, %v359_v21 }
 0x122   :  { %v176_v9 = vsub.f32 %v166_v6, %v174_v7 }
 0x124   :  { %v178_v10 = vsel %vm141_vm4, %v176_v9, 0.0 }
 0x125   :  { %v181_v12 = vsel %vm179_vm5, %v178_v10, 0.0 }
 0x126   :  { %v182_v15 = vadd.f32 %v181_v12, %v180_v11 }
 0x128   :  { %183 = vadd.xlane.f32.xlu2 %v182_v15 }
 0x129   :  { %v220_v16 = vpop.xlane.xlu2 %219 }
 0x12a   :  { %v224_v22 = vsub.f32 %v213_v20, %v220_v16 }
 0x12c   :  { %v226_v26 = vsel %vm140_vm3, %v224_v22, 0.0 }
 0x12d   :  { %v228_v32 = vsel %vm179_vm5, %v226_v26, 0.0 }
 0x131   :  { %v259_v18 = vpop.xlane.xlu2 %258 }
 0x132   :  { %360 = vlog2.f32 %v259_v18 }
 0x133   :  { %362 = vlog2.f32 %v256_v19 }
 0x138   :  { %v361_v23 = vpop.eup %360 }
 0x139   :  { %v223_v25 = vpop.xlane.xlu2 %222  ;;  %v263_v27 = vmul.f32 0.6931472, %v361_v23  ;;  %v363_v30 = vpop.eup %362 }
 0x13a   :  { %v225_v28 = vsub.f32 %v215_v24, %v223_v25  ;;  %v261_v37 = vmul.f32 0.6931472, %v363_v30 }
 0x13b   :  { %v273_v34 = vsub.f32 %v263_v27, %v271_v31 }
 0x13c   :  { %v227_v29 = vsel %vm141_vm4, %v225_v28, 0.0 }
 0x13d   :  { %v229_v33 = vsel %vm179_vm5, %v227_v29, 0.0  ;;  %v275_v40 = vsel %vm141_vm4, %v273_v34, 0.0 }
 0x13e   :  { %v230_v36 = vadd.f32 %v229_v33, %v228_v32  ;;  %v277_v43 = vsel %vm179_vm5, %v275_v40, 0.0 }
 0x140   :  { %231 = vadd.xlane.f32.xlu1 %v230_v36 }
 0x141   :  { %v268_v38 = vpop.xlane.xlu2 %267 }
 0x142   :  { %v272_v39 = vsub.f32 %v261_v37, %v268_v38 }
 0x144   :  { %v274_v41 = vsel %vm140_vm3, %v272_v39, 0.0 }
 0x145   :  { %v276_v42 = vsel %vm179_vm5, %v274_v41, 0.0 }
 0x146   :  { %v278_v44 = vadd.f32 %v277_v43, %v276_v42 }
 0x148   :  { %279 = vadd.xlane.f32.xlu2 %v278_v44 }
 0x19b   :  { %v184_v45 = vpop.xlane.xlu2 %183 }
 0x19c   :  { %v185_v46 = vrot.slane %v184_v45, 4 }
 0x19e   :  { %v186_v47 = vadd.f32 %v185_v46, %v184_v45 }
 0x1a0   :  { %v187_v48 = vrot.slane %v186_v47, 2 }
 0x1a2   :  { %v188_v49 = vadd.f32 %v187_v48, %v186_v47 }
 0x1a4   :  { %v189_v50 = vrot.slane %v188_v49, 1 }
 0x1a6   :  { %v190_v51 = vadd.f32 %v189_v50, %v188_v49 }
 0x1a8   :  { %326 = vpush %v190_v51 }
 0x1b3   :  { %v232_v52 = vpop.xlane.xlu1 %231 }
 0x1b4   :  { %v233_v14 = vrot.slane %v232_v52, 4 }
 0x1b6   :  { %v234_v53 = vadd.f32 %v233_v14, %v232_v52 }
 0x1b8   :  { %v235_v54 = vrot.slane %v234_v53, 2 }
 0x1ba   :  { %v236_v13 = vadd.f32 %v235_v54, %v234_v53 }
 0x1bb   :  { %v280_v55 = vpop.xlane.xlu2 %279 }
 0x1bc   :  { %v281_v56 = vrot.slane %v280_v55, 4  ;;  %v237_v57 = vrot.slane %v236_v13, 1 }
 0x1be   :  { %v282_v58 = vadd.f32 %v281_v56, %v280_v55  ;;  %v238_v59 = vadd.f32 %v237_v57, %v236_v13 }
 0x1c0   :  { %v283_v60 = vrot.slane %v282_v58, 2  ;;  %328 = vpush %v238_v59 }
 0x1c2   :  { %v284_v61 = vadd.f32 %v283_v60, %v282_v58 }
 0x1c4   :  { %v285_v62 = vrot.slane %v284_v61, 1 }
 0x1c6   :  { %v286_v63 = vadd.f32 %v285_v62, %v284_v61 }
 0x1c8   :  { %330 = vpush %v286_v63 }
 0x1d9   :  { %s327_s7 = spop %326 }
 0x1da   :  { %v292_v3 = vstv %s327_s7 }
 0x1db   :  { %v293_v5 = vsel %vm291_vm7, %v292_v3, 0.0 }
 0x1f1   :  { %s329_s8 = spop %328 }
 0x1f2   :  { %v295_v2 = vstv %s329_s8 }
 0x1f3   :  { %v296_v4 = vsel %vm294_vm6, %v295_v2, 0.0 }
 0x1f4   :  { %v297_v6 = vadd.f32 %v296_v4, %v293_v5 }
 0x1f9   :  { %s331_s9 = spop %330 }
 0x1fa   :  { %v299_v7 = vstv %s331_s9 }
 0x1fb   :  { %v300_v9 = vsel %vm298_vm8, %v299_v7, 0.0 }
 0x1fc   :  { %v301_v10 = vadd.f32 %v300_v9, %v297_v6 }
 0x1fe   :  { %v302_v11 = vadd.f32 %v301_v10, %v290_v8 }
 0x200   :  { %303 = vst [vmem:[%s530_s4] sm:$0x7] %v302_v11 }
 0x201   :  { %308 = vsyncpa [#allocation3], 1 }
 0x202   :  { %309 = vsyncpa [#allocation5], 1 }

</bundles_post_ra>
